<compile_context>
chip_gen: v5e
topology: v5e:2x2
jax: 0.10.0
libtpu: 0.0.40
codegen_flags: <defaults>
</compile_context>

<pallas_src>
import math
import functools

import jax
import jax.numpy as jnp
from jax import lax
from jax.experimental import pallas as pl
from jax.experimental.pallas import tpu as pltpu


def _round_up(x, m):
    return (x + m - 1) // m * m


def _make_fused_mlp_kernel(n_layers):
    """Kernel computing GELU(... GELU(x @ W1 + b1) ... @ Wn + bn) on one batch tile."""

    def kernel(x_ref, *refs):
        o_ref = refs[-1]
        wb_refs = refs[:-1]           # [w1, b1, w2, b2, ...] (weights bf16, biases f32)
        h = x_ref[...]                # (TB, K0p) f32
        for li in range(n_layers):
            w = wb_refs[2 * li][...]          # (Kp, Np) bf16, VMEM-resident
            b = wb_refs[2 * li + 1][...]      # (1, Np)  f32
            y = jnp.dot(h.astype(jnp.bfloat16), w,
                        preferred_element_type=jnp.float32) + b
            # Exact (erf-based) GELU, matching torch.nn.GELU() default, in f32.
            h = 0.5 * y * (1.0 + lax.erf(y * (1.0 / math.sqrt(2.0))))
        o_ref[...] = h.astype(o_ref.dtype)

    return kernel


def fused_mlp(x, params, *, block_b=512):
    """Fused MLP stack: x (B, d0) f32, params = [(W (din,dout), b (dout,)), ...]."""
    assert block_b % 8 == 0
    B, d0 = x.shape
    n_layers = len(params)
    dims = [d0] + [w.shape[1] for (w, _) in params]
    dims_p = [_round_up(d, 128) for d in dims]         # lane-dense feature dims

    # Batch tiling: full auto-pipelined grid for large B, single tile for small B.
    TB = block_b if B >= block_b else _round_up(B, 8)
    Bp = _round_up(B, TB)

    x_p = jnp.pad(x, ((0, Bp - B), (0, dims_p[0] - d0)))

    flat_wb = []
    for li, (w, b) in enumerate(params):
        kin, kout = w.shape
        kin_p, kout_p = dims_p[li], dims_p[li + 1]
        w_p = jnp.pad(w, ((0, kin_p - kin), (0, kout_p - kout))).astype(jnp.bfloat16)
        b_p = jnp.pad(b, (0, kout_p - kout)).reshape(1, kout_p).astype(jnp.float32)
        flat_wb += [w_p, b_p]

    in_specs = [pl.BlockSpec((TB, dims_p[0]), lambda i: (i, 0))]
    for li in range(n_layers):
        kin_p, kout_p = dims_p[li], dims_p[li + 1]
        # Constant index maps -> weights/biases stay resident across batch tiles.
        in_specs.append(pl.BlockSpec((kin_p, kout_p), lambda i: (0, 0)))
        in_specs.append(pl.BlockSpec((1, kout_p), lambda i: (0, 0)))

    out_spec = pl.BlockSpec((TB, dims_p[-1]), lambda i: (i, 0))

    out_p = pl.pallas_call(
        _make_fused_mlp_kernel(n_layers),
        out_shape=jax.ShapeDtypeStruct((Bp, dims_p[-1]), x.dtype),
        grid_spec=pltpu.PrefetchScalarGridSpec(
            num_scalar_prefetch=0,
            grid=(Bp // TB,),
            in_specs=in_specs,
            out_specs=out_spec,
        ),
        compiler_params=pltpu.CompilerParams(
            dimension_semantics=("parallel",)),
    )(x_p, *flat_wb)

    return out_p[:B, :dims[-1]]


def init_mlp_params(key, layers):
    """Xavier-normal weights (torch.nn.init.xavier_normal_), zero biases."""
    params = []
    for in_size, out_size in zip(layers[:-1], layers[1:]):
        key, sub = jax.random.split(key)
        std = math.sqrt(2.0 / (in_size + out_size))
        # PyTorch weight is (out, in); we store its transpose (in, out).
        w = jax.random.normal(sub, (in_size, out_size), dtype=jnp.float32) * std
        b = jnp.zeros((out_size,), dtype=jnp.float32)
        params.append((w, b))
    return params


def mlp_layers_forward(x, params, dnn_layers, *, block_b=512):
    """Mirrors MLP_Layers.forward: apply the fused MLP stack if dnn_layers > 0, else identity."""
    if dnn_layers <= 0:
        return x
    return fused_mlp(x, params, block_b=block_b)


if __name__ == "__main__":
    layers = [32, 64, 32]
    dnn_layers = 2
    drop_rate = 0.1  # unused at inference (dropout == identity in eval mode)
    batch = 8

    key = jax.random.PRNGKey(0)
    k_in, k_params, k_big = jax.random.split(key, 3)
    x = jax.random.normal(k_in, (batch, layers[0]), dtype=jnp.float32)
    params = init_mlp_params(k_params, layers)

    out = mlp_layers_forward(x, params, dnn_layers)
    out = jax.block_until_ready(out)
    assert out.shape == (batch, layers[-1])

    # Pure-JAX references.
    def ref_fwd(xr, mimic_bf16):
        h = xr
        for (w, b) in params:
            if mimic_bf16:
                y = jnp.dot(h.astype(jnp.bfloat16), w.astype(jnp.bfloat16),
                            preferred_element_type=jnp.float32) + b
            else:
                y = h @ w + b
            h = 0.5 * y * (1.0 + lax.erf(y / math.sqrt(2.0)))
        return h

    ref_bf16 = ref_fwd(x, True)    # same numerics as the kernel (bf16 MXU, f32 acc)
    ref_f32 = ref_fwd(x, False)    # full-f32 PyTorch-equivalent reference
    assert jnp.allclose(out, ref_bf16, atol=1e-3, rtol=1e-3)
    assert jnp.allclose(out, ref_f32, atol=5e-2, rtol=5e-2)

    # Identity path (dnn_layers == 0).
    assert jnp.allclose(mlp_layers_forward(x, params, 0), x)

    # Exercise the batch-tiled grid (>1 tile) + batch/feature padding path.
    xb = jax.random.normal(k_big, (272, layers[0]), dtype=jnp.float32)
    outb = jax.block_until_ready(
        mlp_layers_forward(xb, params, dnn_layers, block_b=128))
    assert outb.shape == (272, layers[-1])
    assert jnp.allclose(outb, ref_fwd(xb, True), atol=1e-3, rtol=1e-3)

    print("KERNEL_OK")
</pallas_src>

<mosaic_0001>
module attributes {stable_mosaic.version = 11 : i64} {
  func.func @kernel(%arg0: i32, %arg1: memref<8x128xf32, #tpu.memory_space<vmem>>, %arg2: memref<128x128xbf16, #tpu.memory_space<vmem>>, %arg3: memref<1x128xf32, #tpu.memory_space<vmem>>, %arg4: memref<128x128xbf16, #tpu.memory_space<vmem>>, %arg5: memref<1x128xf32, #tpu.memory_space<vmem>>, %arg6: memref<8x128xf32, #tpu.memory_space<vmem>>) attributes {dimension_semantics = [#tpu.dimension_semantics<parallel>], iteration_bounds = array<i64: 1>, scalar_prefetch = 0 : i64, scratch_operands = 0 : i64, tpu.core_type = #tpu.core_type<tc>, window_params = [{transform_indices = @transform_0, window_bounds = array<i64: 8, 128>}, {pipeline_mode = #tpu.pipeline_mode<synchronous>, transform_indices = @transform_1, window_bounds = array<i64: 128, 128>}, {pipeline_mode = #tpu.pipeline_mode<synchronous>, transform_indices = @transform_2, window_bounds = array<i64: 1, 128>}, {pipeline_mode = #tpu.pipeline_mode<synchronous>, transform_indices = @transform_3, window_bounds = array<i64: 128, 128>}, {pipeline_mode = #tpu.pipeline_mode<synchronous>, transform_indices = @transform_4, window_bounds = array<i64: 1, 128>}, {transform_indices = @transform_5, window_bounds = array<i64: 8, 128>}]} {
    %c0 = arith.constant 0 : index
    %c0_0 = arith.constant 0 : index
    %0 = vector.load %arg1[%c0, %c0_0] : memref<8x128xf32, #tpu.memory_space<vmem>>, vector<8x128xf32>
    %c0_1 = arith.constant 0 : index
    %c0_2 = arith.constant 0 : index
    %1 = vector.load %arg2[%c0_1, %c0_2] : memref<128x128xbf16, #tpu.memory_space<vmem>>, vector<128x128xbf16>
    %c0_3 = arith.constant 0 : index
    %c0_4 = arith.constant 0 : index
    %2 = vector.load %arg3[%c0_3, %c0_4] : memref<1x128xf32, #tpu.memory_space<vmem>>, vector<1x128xf32>
    %3 = arith.truncf %0 : vector<8x128xf32> to vector<8x128xbf16>
    %cst = arith.constant dense<0.000000e+00> : vector<8x128xf32>
    %4 = tpu.matmul %3, %1, %cst {dimension_numbers = #tpu.dot_dimension_numbers<[1], [0], [0], [1], [0, 0, 1, 1], [], []>} : vector<8x128xbf16>, vector<128x128xbf16>, vector<8x128xf32> -> vector<8x128xf32>
    %5 = vector.broadcast %2 : vector<1x128xf32> to vector<8x128xf32>
    %6 = arith.addf %4, %5 : vector<8x128xf32>
    %cst_5 = arith.constant 5.000000e-01 : f32
    %7 = vector.broadcast %cst_5 : f32 to vector<8x128xf32>
    %8 = arith.mulf %7, %6 : vector<8x128xf32>
    %cst_6 = arith.constant 0.707106769 : f32
    %9 = vector.broadcast %cst_6 : f32 to vector<8x128xf32>
    %10 = arith.mulf %6, %9 : vector<8x128xf32>
    %11 = math.erf %10 : vector<8x128xf32>
    %cst_7 = arith.constant 1.000000e+00 : f32
    %12 = vector.broadcast %cst_7 : f32 to vector<8x128xf32>
    %13 = arith.addf %12, %11 : vector<8x128xf32>
    %14 = arith.mulf %8, %13 : vector<8x128xf32>
    %c0_8 = arith.constant 0 : index
    %c0_9 = arith.constant 0 : index
    %15 = vector.load %arg4[%c0_8, %c0_9] : memref<128x128xbf16, #tpu.memory_space<vmem>>, vector<128x128xbf16>
    %c0_10 = arith.constant 0 : index
    %c0_11 = arith.constant 0 : index
    %16 = vector.load %arg5[%c0_10, %c0_11] : memref<1x128xf32, #tpu.memory_space<vmem>>, vector<1x128xf32>
    %17 = arith.truncf %14 : vector<8x128xf32> to vector<8x128xbf16>
    %cst_12 = arith.constant dense<0.000000e+00> : vector<8x128xf32>
    %18 = tpu.matmul %17, %15, %cst_12 {dimension_numbers = #tpu.dot_dimension_numbers<[1], [0], [0], [1], [0, 0, 1, 1], [], []>} : vector<8x128xbf16>, vector<128x128xbf16>, vector<8x128xf32> -> vector<8x128xf32>
    %19 = vector.broadcast %16 : vector<1x128xf32> to vector<8x128xf32>
    %20 = arith.addf %18, %19 : vector<8x128xf32>
    %cst_13 = arith.constant 5.000000e-01 : f32
    %21 = vector.broadcast %cst_13 : f32 to vector<8x128xf32>
    %22 = arith.mulf %21, %20 : vector<8x128xf32>
    %cst_14 = arith.constant 0.707106769 : f32
    %23 = vector.broadcast %cst_14 : f32 to vector<8x128xf32>
    %24 = arith.mulf %20, %23 : vector<8x128xf32>
    %25 = math.erf %24 : vector<8x128xf32>
    %cst_15 = arith.constant 1.000000e+00 : f32
    %26 = vector.broadcast %cst_15 : f32 to vector<8x128xf32>
    %27 = arith.addf %26, %25 : vector<8x128xf32>
    %28 = arith.mulf %22, %27 : vector<8x128xf32>
    %c0_16 = arith.constant 0 : index
    %c0_17 = arith.constant 0 : index
    %29 = vector.load %arg6[%c0_16, %c0_17] : memref<8x128xf32, #tpu.memory_space<vmem>>, vector<8x128xf32>
    tpu.vector_store %arg6[%c0_16, %c0_17], %28 {strides = array<i32>} : memref<8x128xf32, #tpu.memory_space<vmem>>, vector<8x128xf32>,
    return
  }
  func.func @transform_0(%arg0: i32) -> (i32, i32) {
    %c0_i32 = arith.constant 0 : i32
    %c0_i32_0 = arith.constant 0 : i32
    return %arg0, %c0_i32 : i32, i32
  }
  func.func @transform_1(%arg0: i32) -> (i32, i32) {
    %c0_i32 = arith.constant 0 : i32
    %c0_i32_0 = arith.constant 0 : i32
    %c0_i32_1 = arith.constant 0 : i32
    return %c0_i32, %c0_i32_0 : i32, i32
  }
  func.func @transform_2(%arg0: i32) -> (i32, i32) {
    %c0_i32 = arith.constant 0 : i32
    %c0_i32_0 = arith.constant 0 : i32
    %c0_i32_1 = arith.constant 0 : i32
    return %c0_i32, %c0_i32_0 : i32, i32
  }
  func.func @transform_3(%arg0: i32) -> (i32, i32) {
    %c0_i32 = arith.constant 0 : i32
    %c0_i32_0 = arith.constant 0 : i32
    %c0_i32_1 = arith.constant 0 : i32
    return %c0_i32, %c0_i32_0 : i32, i32
  }
  func.func @transform_4(%arg0: i32) -> (i32, i32) {
    %c0_i32 = arith.constant 0 : i32
    %c0_i32_0 = arith.constant 0 : i32
    %c0_i32_1 = arith.constant 0 : i32
    return %c0_i32, %c0_i32_0 : i32, i32
  }
  func.func @transform_5(%arg0: i32) -> (i32, i32) {
    %c0_i32 = arith.constant 0 : i32
    %c0_i32_0 = arith.constant 0 : i32
    return %arg0, %c0_i32 : i32, i32
  }
}

</mosaic_0001>

<bundles_post_ra>
// kernel: tpu_custom_call.1
= control target key start
LH: loop header
LB: loop body
LE: loop exit
PB: predicated region body
PF: predicated region fallthrough
CT: control target
= control target key end

     0   :  { %10 = vsyncpa [#allocation3], 0  ;;  %s588_s0 = inlined_call_operand.hbm [shape: f32[8,128], index: 0, kind: input, shape index: {}]   ;;  %s589_s1 = inlined_call_operand.hbm [shape: bf16[128,128], index: 1, kind: input, shape index: {}]   ;;  %s590_s2 = inlined_call_operand.vmem [shape: f32[1,128], index: 2, kind: input, shape index: {}]   ;;  %s591_s3 = inlined_call_operand.hbm [shape: bf16[128,128], index: 3, kind: input, shape index: {}]   ;;  %s592_s4 = inlined_call_operand.vmem [shape: f32[1,128], index: 4, kind: input, shape index: {}]   ;;  %s593_s5 = inlined_call_operand.hbm [shape: f32[8,128], index: 5, kind: output, shape index: {}]  }
   0x1   :  { %11 = vsyncpa [#allocation6], 0  ;;  %s28_s20 = sshll.u32 %s589_s1, 4  ;;  %s29_s20 = int_to_ptr.hbm [resolvable:$true] %s28_s20 }
   0x2   :  { %12 = vsyncpa [#allocation4], 0  ;;  %s534_s21 = smov [#allocation5]   ;;  %s18_s25 = sshll.u32 %s588_s0, 4  ;;  %s19_s25 = int_to_ptr.hbm [resolvable:$true] %s18_s25 }
   0x3   :  { %s30_s22 = sshll.u32 %s534_s21, 4  ;;  %s535_s26 = smov 64   ;;  %s31_s22 = int_to_ptr.vmem [resolvable:$true] %s30_s22 }
   0x4   :  { %s536_s27 = smov 4   ;;  %s537_s28 = smov [#allocation2]  }
   0x5   :  { %36 = dma.hbm_to_vmem [thread:$0]  %s29_s20, 1024, %s31_s22, [#allocation6], %s535_s26, %s535_s26, %s536_s27  }
   0x6   :  { %s20_s29 = sshll.u32 %s537_s28, 4  ;;  %s43_s7 = sshll.u32 %s591_s3, 4  ;;  %s21_s29 = int_to_ptr.vmem [resolvable:$true] %s20_s29  ;;  %s44_s7 = int_to_ptr.hbm [resolvable:$true] %s43_s7 }
   0x7   :  { %23 = dma.hbm_to_vmem [thread:$0]  %s19_s25, 128, %s21_s29, [#allocation3]  }
   0x8   :  { %s538_s1 = smov [#allocation7]  }
   0x9   :  { %s45_s8 = sshll.u32 %s538_s1, 4  ;;  %s46_s8 = int_to_ptr.vmem [resolvable:$true] %s45_s8 }
   0xa   :  { %51 = dma.hbm_to_vmem [thread:$0]  %s44_s7, 1024, %s46_s8, [#allocation6], %s535_s26, %s535_s26, %s536_s27  }
   0xb   :  { %528 = dma.done.wait [#allocation3], 128  }
   0xc   :  { %529 = vsyncadd [#allocation3], 4294967168 }
   0xd   :  { %530 = dma.done.wait [#allocation6], 2048  }
   0xe   :  { %531 = vsyncadd [#allocation6], 4294965248  ;;  %v411_v0 = vld [vmem:[#allocation5 + $0x38] sm:$0xff]  ;;  %v410_v1 = vld [vmem:[#allocation5 + $0x30] sm:$0xff]  ;;  %s327_s13 = sshll.u32 %s593_s5, 4  ;;  %s328_s13 = int_to_ptr.hbm [resolvable:$true] %s327_s13 }
   0xf   :  { %136 = vmatpush.bf16.msra.mxu0 %v411_v0  ;;  %v409_v2 = vld [vmem:[#allocation5 + $0x28] sm:$0xff]  ;;  %v408_v3 = vld [vmem:[#allocation5 + $0x20] sm:$0xff]  ;;  %v407_v4 = vld [vmem:[#allocation5 + $0x18] sm:$0xff] }
  0x10   :  { %v406_v5 = vld [vmem:[#allocation5 + $0x10] sm:$0xff]  ;;  %v405_v6 = vld [vmem:[#allocation5 + $0x8] sm:$0xff]  ;;  %v404_v7 = vld [vmem:[#allocation5] sm:$0xff] }
  0x11   :  { %v66_v8 = vld [vmem:[#allocation2] sm:$0xff]  ;;  %v418_v11 = vld [vmem:[#allocation7 + $0x30] sm:$0xff]  ;;  %v417_v13 = vld [vmem:[#allocation7 + $0x28] sm:$0xff] }
  0x12   :  { %v84_v9 = vpack.c.bf16 %v66_v8, %v66_v8  ;;  %v419_v10 = vld [vmem:[#allocation7 + $0x38] sm:$0xff]  ;;  %v416_v16 = vld [vmem:[#allocation7 + $0x20] sm:$0xff]  ;;  %v414_v23 = vld [vmem:[#allocation7 + $0x10] sm:$0xff] }
  0x13   :  { %137 = vmatpush.bf16.msra.mxu0 %v410_v1  ;;  %262 = vmatpush.bf16.msra.mxu1 %v419_v10  ;;  %v426_v12 = vld [vmem:[%s590_s2] ss:$0 sm:$0xff]  ;;  %v413_v28 = vld [vmem:[#allocation7 + $0x8] sm:$0xff]  ;;  %v412_v32 = vld [vmem:[#allocation7] sm:$0xff] }
  0x14   :  { %v415_v19 = vld [vmem:[#allocation7 + $0x18] sm:$0xff] }
  0x15   :  { %v427_v62 = vld [vmem:[%s592_s4] ss:$0 sm:$0xff]  ;;  %s539_s4 = smov [#allocation8]  }
  0x16   :  { %s325_s10 = sshll.u32 %s539_s4, 4  ;;  %s326_s10 = int_to_ptr.vmem [resolvable:$true] %s325_s10 }
  0x17   :  { %138 = vmatpush.bf16.msra.mxu0 %v409_v2  ;;  %263 = vmatpush.bf16.msra.mxu1 %v418_v11 }
  0x1b   :  { %139 = vmatpush.bf16.msra.mxu0 %v408_v3  ;;  %264 = vmatpush.bf16.msra.mxu1 %v417_v13 }
  0x1f   :  { %140 = vmatpush.bf16.msra.mxu0 %v407_v4  ;;  %265 = vmatpush.bf16.msra.mxu1 %v416_v16 }
  0x23   :  { %141 = vmatpush.bf16.msra.mxu0 %v406_v5  ;;  %266 = vmatpush.bf16.msra.mxu1 %v415_v19 }
  0x27   :  { %142 = vmatpush.bf16.msra.mxu0 %v405_v6  ;;  %267 = vmatpush.bf16.msra.mxu1 %v414_v23 }
  0x2b   :  { %143 = vmatpush.bf16.msra.mxu0 %v404_v7  ;;  %268 = vmatpush.bf16.msra.mxu1 %v413_v28 }
  0x2e   :  { %144 = vmatmul.bf16.vlgmr.msra.gmra.mxu0 %v84_v9 }
  0x2f   :  { %269 = vmatpush.bf16.msra.mxu1 %v412_v32 }
  0xab   :  { %v145_v14 = vpop.f32.mrf.mxu0 }
  0xac   :  { %v146_v15 = vadd.f32 %v426_v12, %v145_v14 }
  0xae   :  { %v150_v17 = vmul.f32 0.70710677, %v146_v15  ;;  %v149_v58 = vmul.f32 0.5, %v146_v15 }
  0xb0   :  { %v151_v18 = vmul.f32 %v150_v17, %v150_v17 }
  0xb2   :  { %v152_v20 = vmin.f32 %v151_v18, 16.0 }
  0xb3   :  { %v147_v21 = vpop.f32.mrf.mxu0 }
  0xb4   :  { %v153_v22 = vmul.f32 2.1237322e-06, %v152_v20  ;;  %v164_v24 = vmul.f32 3.8918573e-05, %v152_v20 }
  0xb6   :  { %v154_v25 = vadd.f32 0.00028619796, %v153_v22  ;;  %v165_v26 = vadd.f32 0.001143296, %v164_v24 }
  0xb8   :  { %v155_v27 = vmul.f32 %v154_v25, %v152_v20  ;;  %v166_v29 = vmul.f32 %v165_v26, %v152_v20 }
  0xba   :  { %v167_v30 = vadd.f32 0.014752088, %v166_v29  ;;  %v156_v31 = vadd.f32 0.0036580483, %v155_v27 }
  0xbc   :  { %v168_v33 = vmul.f32 %v167_v30, %v152_v20  ;;  %v157_v35 = vmul.f32 %v156_v31, %v152_v20 }
  0xbe   :  { %v169_v34 = vadd.f32 0.112945676, %v168_v33  ;;  %v158_v38 = vadd.f32 0.05243302, %v157_v35 }
  0xc0   :  { %v170_v36 = vmul.f32 %v169_v34, %v152_v20  ;;  %v159_v41 = vmul.f32 %v158_v38, %v152_v20 }
  0xc2   :  { %v171_v37 = vadd.f32 0.4994258, %v170_v36  ;;  %v160_v42 = vadd.f32 0.18741608, %v159_v41 }
  0xc4   :  { %v172_v39 = vmul.f32 %v171_v37, %v152_v20  ;;  %v161_v44 = vmul.f32 %v160_v42, %v152_v20 }
  0xc6   :  { %v173_v40 = vadd.f32 1.0, %v172_v39  ;;  %v162_v48 = vadd.f32 1.1283791, %v161_v44 }
  0xc8   :  { %428 = vrcp.f32 %v173_v40  ;;  %v185_v47 = vand.u32 2147483648, %v173_v40  ;;  %v183_v50 = vand.u32 2147483647, %v173_v40  ;;  %vm179_vm1 = vweird.f32 %v173_v40 }
  0xc9   :  { %v163_v53 = vmul.f32 %v162_v48, %v150_v17 }
  0xca   :  { %v186_v52 = vor.u32 1.1754944e-38, %v185_v47  ;;  %vm184_vm3 = vcmp.eq.f32.partialorder %v183_v50, 8.507059e+37 }
  0xce   :  { %v429_v43 = vpop.eup %428 }
  0xcf   :  { %v175_v45 = vmul.f32 %v429_v43, %v173_v40  ;;  %vm180_vm0 = vweird.f32 %v429_v43 }
  0xd0   :  { %vm181_vm2 = vmor %vm179_vm1, %vm180_vm0 }
  0xd1   :  { %v176_v46 = vsub.f32 1.0, %v175_v45 }
  0xd3   :  { %v177_v49 = vmul.f32 %v429_v43, %v176_v46 }
  0xd5   :  { %v178_v51 = vadd.f32 %v429_v43, %v177_v49 }
  0xd7   :  { %v182_v54 = vsel %vm181_vm2, %v429_v43, %v178_v51 }
  0xd8   :  { %v187_v55 = vsel %vm184_vm3, %v186_v52, %v182_v54 }
  0xd9   :  { %v188_v56 = vmul.f32 %v187_v55, %v163_v53 }
  0xdb   :  { %v370_v57 = vclamps-f32 %v188_v56, 1.0 }
  0xdd   :  { %v191_v59 = vadd.f32 1.0, %v370_v57 }
  0xdf   :  { %v192_v60 = vmul.f32 %v191_v59, %v149_v58 }
  0xe1   :  { %v210_v61 = vpack.c.bf16 %v192_v60, %v192_v60 }
  0xe3   :  { %270 = vmatmul.bf16.vlgmr.msra.gmra.mxu1 %v210_v61 }
 0x160   :  { %v271_v63 = vpop.f32.mrf.mxu1 }
 0x161   :  { %v272_v0 = vadd.f32 %v427_v62, %v271_v63 }
 0x163   :  { %v276_v1 = vmul.f32 0.70710677, %v272_v0  ;;  %v275_v38 = vmul.f32 0.5, %v272_v0 }
 0x165   :  { %v277_v2 = vmul.f32 %v276_v1, %v276_v1 }
 0x167   :  { %v278_v3 = vmin.f32 %v277_v2, 16.0 }
 0x168   :  { %v273_v4 = vpop.f32.mrf.mxu1 }
 0x169   :  { %v279_v5 = vmul.f32 2.1237322e-06, %v278_v3  ;;  %v290_v6 = vmul.f32 3.8918573e-05, %v278_v3 }
 0x16b   :  { %v280_v7 = vadd.f32 0.00028619796, %v279_v5  ;;  %v291_v8 = vadd.f32 0.001143296, %v290_v6 }
 0x16d   :  { %v281_v9 = vmul.f32 %v280_v7, %v278_v3  ;;  %v292_v10 = vmul.f32 %v291_v8, %v278_v3 }
 0x16f   :  { %v293_v11 = vadd.f32 0.014752088, %v292_v10  ;;  %v282_v12 = vadd.f32 0.0036580483, %v281_v9 }
 0x171   :  { %v294_v13 = vmul.f32 %v293_v11, %v278_v3  ;;  %v283_v15 = vmul.f32 %v282_v12, %v278_v3 }
 0x173   :  { %v295_v14 = vadd.f32 0.112945676, %v294_v13  ;;  %v284_v18 = vadd.f32 0.05243302, %v283_v15 }
 0x175   :  { %v296_v16 = vmul.f32 %v295_v14, %v278_v3  ;;  %v285_v21 = vmul.f32 %v284_v18, %v278_v3 }
 0x177   :  { %v297_v17 = vadd.f32 0.4994258, %v296_v16  ;;  %v286_v22 = vadd.f32 0.18741608, %v285_v21 }
 0x179   :  { %v298_v19 = vmul.f32 %v297_v17, %v278_v3  ;;  %v287_v24 = vmul.f32 %v286_v22, %v278_v3 }
 0x17b   :  { %v299_v20 = vadd.f32 1.0, %v298_v19  ;;  %v288_v28 = vadd.f32 1.1283791, %v287_v24 }
 0x17d   :  { %430 = vrcp.f32 %v299_v20  ;;  %v311_v27 = vand.u32 2147483648, %v299_v20  ;;  %v309_v30 = vand.u32 2147483647, %v299_v20  ;;  %vm305_vm5 = vweird.f32 %v299_v20 }
 0x17e   :  { %v289_v33 = vmul.f32 %v288_v28, %v276_v1 }
 0x17f   :  { %v312_v32 = vor.u32 1.1754944e-38, %v311_v27  ;;  %vm310_vm7 = vcmp.eq.f32.partialorder %v309_v30, 8.507059e+37 }
 0x183   :  { %v431_v23 = vpop.eup %430 }
 0x184   :  { %v301_v25 = vmul.f32 %v431_v23, %v299_v20  ;;  %vm306_vm4 = vweird.f32 %v431_v23 }
 0x185   :  { %vm307_vm6 = vmor %vm305_vm5, %vm306_vm4 }
 0x186   :  { %v302_v26 = vsub.f32 1.0, %v301_v25 }
 0x188   :  { %v303_v29 = vmul.f32 %v431_v23, %v302_v26 }
 0x18a   :  { %v304_v31 = vadd.f32 %v431_v23, %v303_v29 }
 0x18c   :  { %v308_v34 = vsel %vm307_vm6, %v431_v23, %v304_v31 }
 0x18d   :  { %v313_v35 = vsel %vm310_vm7, %v312_v32, %v308_v34 }
 0x18e   :  { %v314_v36 = vmul.f32 %v313_v35, %v289_v33 }
 0x190   :  { %v403_v37 = vclamps-f32 %v314_v36, 1.0 }
 0x192   :  { %v317_v39 = vadd.f32 1.0, %v403_v37 }
 0x194   :  { %v318_v40 = vmul.f32 %v317_v39, %v275_v38 }
 0x196   :  { %319 = vst [vmem:[#allocation8] sm:$0xff] %v318_v40 }
 0x197   :  { %330 = dma.vmem_to_hbm [thread:$0]  %s326_s10, 128, %s328_s13, [#allocation4]  }
 0x198   :  { %532 = dma.done.wait [#allocation4], 128  }
 0x199   :  { %533 = vsyncadd [#allocation4], 4294967168 }
 0x19a   :  { %335 = vsyncpa [#allocation3], 1 }
 0x19b   :  { %336 = vsyncpa [#allocation6], 1 }
 0x19c   :  { %337 = vsyncpa [#allocation4], 1 }

</bundles_post_ra>
